<compile_context>
chip_gen: v6e
topology: v6e:2x2x1
jax: 0.10.0
libtpu: 0.0.40
codegen_flags: <defaults>
</compile_context>

<pallas_src>
import jax
import jax.numpy as jnp
from jax.experimental import pallas as pl
from jax.experimental.pallas import tpu as pltpu


def _sigmoid_mul_kernel(gate_ref, x_ref, o_ref):
    # gate_ref: (1, blk)   x_ref: (hw, blk)   o_ref: (hw, blk)
    g = jax.nn.sigmoid(gate_ref[...])          # EUP exp + VPU, 1 sublane row
    o_ref[...] = x_ref[...] * g                # sublane-broadcast multiply


def _pick_block_nc(nc: int) -> int:
    """Lane-dense block width along the flattened N*C axis.

    Prefer a small, even number of blocks (2-4) so per-step overhead stays
    negligible while still enabling DMA/compute overlap and megacore sharding.
    Each block's lane width must be a multiple of 128 (or the full extent).
    """
    if nc % 128 != 0:
        return nc                                   # single full block
    for nblocks in (2, 4, 3, 6, 8):
        if nc % nblocks == 0:
            blk = nc // nblocks
            if blk % 128 == 0 and blk >= 512:
                return blk
    return nc


def sigmoid_mul(x_gate, x):
    """x_gate: [N, C, 1, 1], x: [N, C, H, W]  ->  [N, C, H, W]  (NCHW)."""
    n, c, h, w = x.shape
    assert x_gate.shape == (n, c, 1, 1)
    nc = n * c
    hw = h * w

    # Lane-dense presentation: channels on the lane axis, spatial on sublanes.
    gate_row = x_gate.reshape(1, nc)                # (1, NC)
    x_t = x.reshape(nc, hw).T                       # (HW, NC)

    blk = _pick_block_nc(nc)
    grid = (nc // blk,)

    out_t = pl.pallas_call(
        _sigmoid_mul_kernel,
        out_shape=jax.ShapeDtypeStruct((hw, nc), x.dtype),
        grid=grid,
        in_specs=[
            pl.BlockSpec((1, blk), lambda i: (0, i)),    # gate row
            pl.BlockSpec((hw, blk), lambda i: (0, i)),   # feature slab
        ],
        out_specs=pl.BlockSpec((hw, blk), lambda i: (0, i)),
        compiler_params=pltpu.CompilerParams(
            dimension_semantics=("parallel",),
        ),
    )(gate_row, x_t)

    return out_t.T.reshape(n, c, h, w)


if __name__ == "__main__":
    key = jax.random.PRNGKey(0)
    k1, k2 = jax.random.split(key)

    # Shapes implied by the module: gate [1, C, 1, 1], features [1, C, 7, 7]
    N, C, H, W = 1, 3840, 7, 7
    x1079 = jax.random.normal(k1, (N, C, 1, 1), dtype=jnp.float32)   # gate
    x1075 = jax.random.normal(k2, (N, C, H, W), dtype=jnp.float32)   # features

    out = sigmoid_mul(x1079, x1075)
    jax.block_until_ready(out)

    # Reference check in plain JAX
    ref = jax.nn.sigmoid(x1079) * x1075
    assert out.shape == (N, C, H, W)
    assert jnp.allclose(out, ref, atol=1e-6, rtol=1e-6)

    print("KERNEL_OK")
</pallas_src>

<mosaic_0001>
module attributes {stable_mosaic.version = 11 : i64} {
  func.func @_sigmoid_mul_kernel(%arg0: i32, %arg1: memref<1x1920xf32, #tpu.memory_space<vmem>>, %arg2: memref<49x1920xf32, #tpu.memory_space<vmem>>, %arg3: memref<49x1920xf32, #tpu.memory_space<vmem>>) attributes {dimension_semantics = [#tpu.dimension_semantics<parallel>], iteration_bounds = array<i64: 2>, scalar_prefetch = 0 : i64, scratch_operands = 0 : i64, tpu.core_type = #tpu.core_type<tc>, window_params = [{transform_indices = @transform_0, window_bounds = array<i64: 1, 1920>}, {transform_indices = @transform_1, window_bounds = array<i64: 49, 1920>}, {transform_indices = @transform_2, window_bounds = array<i64: 49, 1920>}]} {
    %c0 = arith.constant 0 : index
    %c0_0 = arith.constant 0 : index
    %0 = vector.load %arg1[%c0, %c0_0] : memref<1x1920xf32, #tpu.memory_space<vmem>>, vector<1x1920xf32>
    %1 = arith.negf %0 : vector<1x1920xf32>
    %2 = math.exp %1 : vector<1x1920xf32>
    %cst = arith.constant 1.000000e+00 : f32
    %3 = vector.broadcast %cst : f32 to vector<1x1920xf32>
    %4 = arith.addf %3, %2 : vector<1x1920xf32>
    %5 = arith.divf %3, %4 : vector<1x1920xf32>
    %c0_1 = arith.constant 0 : index
    %c0_2 = arith.constant 0 : index
    %6 = vector.load %arg2[%c0_1, %c0_2] : memref<49x1920xf32, #tpu.memory_space<vmem>>, vector<49x1920xf32>
    %7 = vector.broadcast %5 : vector<1x1920xf32> to vector<49x1920xf32>
    %8 = arith.mulf %6, %7 : vector<49x1920xf32>
    %c0_3 = arith.constant 0 : index
    %c0_4 = arith.constant 0 : index
    %9 = vector.load %arg3[%c0_3, %c0_4] : memref<49x1920xf32, #tpu.memory_space<vmem>>, vector<49x1920xf32>
    tpu.vector_store %arg3[%c0_3, %c0_4], %8 {strides = array<i32>} : memref<49x1920xf32, #tpu.memory_space<vmem>>, vector<49x1920xf32>,
    return
  }
  func.func @transform_0(%arg0: i32) -> (i32, i32) {
    %c0_i32 = arith.constant 0 : i32
    %c0_i32_0 = arith.constant 0 : i32
    return %c0_i32, %arg0 : i32, i32
  }
  func.func @transform_1(%arg0: i32) -> (i32, i32) {
    %c0_i32 = arith.constant 0 : i32
    %c0_i32_0 = arith.constant 0 : i32
    return %c0_i32, %arg0 : i32, i32
  }
  func.func @transform_2(%arg0: i32) -> (i32, i32) {
    %c0_i32 = arith.constant 0 : i32
    %c0_i32_0 = arith.constant 0 : i32
    return %c0_i32, %arg0 : i32, i32
  }
}

</mosaic_0001>

<bundles_post_ra>
// kernel: tpu_custom_call.1
= control target key start
LH: loop header
LB: loop body
LE: loop exit
PB: predicated region body
PF: predicated region fallthrough
CT: control target
= control target key end

     0   :  { %7 = vsyncpa [#allocation3], 0  ;;  %s1517_s0 = inlined_call_operand.hbm [shape: f32[1,3840], index: 0, kind: input, shape index: {}]   ;;  %s1518_s1 = inlined_call_operand.hbm [shape: f32[49,3840], index: 1, kind: input, shape index: {}]   ;;  %s1519_s2 = inlined_call_operand.hbm [shape: f32[49,3840], index: 2, kind: output, shape index: {}]  }
   0x1   :  { %9 = vsyncpa [#allocation3 + $0x1], 0 }
   0x2   :  { %10 = vsyncpa [#allocation6], 0 }
   0x3   :  { %12 = vsyncpa [#allocation6 + $0x1], 0 }
   0x4   :  { %13 = vsyncpa [#allocation4], 0 }
   0x5   :  { %15 = vsyncpa [#allocation4 + $0x1], 0  ;;  %s952_s9 = smov 0   ;;  %s954_s10 = smov 0  }
   0x6   :  { %s956_s11 = smov 0   ;;  %s958_s12 = smov 0  }
   0x7 LB: > { %s973_s13 = sadd.s32 4294967295, %s926_s12   ;;  %s719_s14 = sadd.s32 4294967294, %s926_s12   ;;  %s926_s12 = sphi %s958_s12, %s1534_s12   ;;  %s922_s11 = sphi %s956_s11, %s1533_s11   ;;  %s918_s10 = sphi %s954_s10, %s1532_s10   ;;  %s914_s9 = sphi %s952_s9, %s1531_s9  }
   0x8   : > { %s977_s15 = sadd.s32 1, %s926_s12   ;;  %s28_s16 = sadd.s32 1, %s922_s11 }
   0x9   : > { %s25_s17 = ssub.s32 %s926_s12, %s977_s15  ;;  %p35_p0 = scmp.ne.s32.totalorder %s922_s11, %s918_s10 }
   0xa   : > { %p26_p1 = scmp.eq.s32.totalorder %s25_s17, 0  ;;  %p36_p2 = scmp.eq.s32.totalorder %s926_s12, 0 }
   0xb   : > { %p41_p3 = scmp.ne.s32.totalorder %s918_s10, %s914_s9  ;;  %p42_p4 = scmp.eq.s32.totalorder %s973_s13, 0 }
   0xc   : > { %s989_s18 = scalar_select %p26_p1, %s922_s11, %s28_s16  }
   0xd   : > { %p37_p5 = por %p36_p2, %p35_p0  ;;  %p991_p6 = por %p42_p4, %p41_p3 }
   0xe   : > { %p91_p7 = scmp.eq.s32.totalorder %s973_s13, 1  ;;  %p97_p8 = scmp.eq.s32.totalorder %s719_s14, 1 }
   0xf   : > { %s1522_s19 = scalar_select %p991_p6, 1, 0 }
  0x10   : > { %p754_p10 = scmp.lt.s32.totalorder %s926_s12, 2  ;;  %p998_p11 = por %p91_p7, %p35_p0 }
  0x11   : > { %p1002_p12 = por %p97_p8, %p41_p3  ;;  %s1007_s22 = sand.u32 1, %s922_s11  }
  0x12   : > { %s1523_s20 = scalar_select %p998_p11, 1, 0 }
  0x13   : > { %s1524_s21 = scalar_select %p1002_p12, 1, 0 }
  0x14   : > { %s730_s23 = smul.u32 240, %s926_s12  ;;  %p1016_p13 = pnand %p754_p10, %p37_p5 }
  0x15   : > { %s733_s24 = smul.u32 15, %s1007_s22  ;;  %s118_s4 = scalar_lea.sflag [#allocation3], %s1007_s22 }
  0x16   : > { %s1014_s27 = scalar_lea.hbm %s1517_s0, %s730_s23  ;;  %s734_s3 = smul.u32 840, %s1007_s22 }
  0x17   : > { %s121_s29 = scalar_lea.vmem [#allocation2], %s733_s24  ;;  %s802_s5 = scalar_lea.hbm %s1014_s27, 240 }
  0x18   : > { %s129_s30 = sshll.u32 %s121_s29, 4  ;;  %p803_p0 = scmp.ne.s32.totalorder %s1014_s27, %s802_s5  ;;  %s130_s30 = int_to_ptr.vmem [resolvable:$true] %s129_s30 }
  0x19   : > { %p804_p1 = pneg %p1016_p13  ;;  %s807_s8 = scalar_lea.hbm %s1517_s0, 480 }
  0x1a   : > { %p808_p4 = scmp.lt.s32.totalorder %s1014_s27, %s1517_s0  ;;  %p809_p5 = scmp.lt.s32.totalorder %s807_s8, %s802_s5 }
  0x1b   : > { %p805_p2 = pnand %p804_p1, %p803_p0 }
  0x1c   : > { %p810_p7 = por %p809_p5, %p808_p4 }
  0x1d   : > { %p806_p3 = pneg %p805_p2 }
  0x1f   : > { %p811_p8 = pnand %p810_p7, %p806_p3 }
  0x21   : > { %814 = shalt.err (!%p811_p8)
}
  0x22   : > { %s815_s17 = scalar_lea.vmem %s130_s30, 240  ;;  %s928_s23 = smov [#allocation2]  }
  0x23   : > { %p816_p10 = scmp.ne.s32.totalorder %s130_s30, %s815_s17  ;;  %s820_s24 = sshll.u32 %s928_s23, 4  ;;  %s821_s24 = int_to_ptr.vmem [resolvable:$false] %s820_s24 }
  0x24   : > { %s822_s25 = scalar_lea.vmem %s821_s24, 480  ;;  %p823_p2 = scmp.lt.s32.totalorder %s130_s30, %s821_s24 }
  0x25   : > { %p818_p9 = pnand %p816_p10, %p804_p1  ;;  %p824_p12 = scmp.lt.s32.totalorder %s822_s25, %s815_s17 }
  0x27   : > { %p819_p0 = pneg %p818_p9  ;;  %p825_p11 = por %p824_p12, %p823_p2 }
  0x29   : > { %p826_p6 = pnand %p825_p11, %p819_p0 }
  0x2b   : > { %829 = shalt.err (!%p826_p6)
}
  0x2c   : > { %746 = dma.hbm_to_vmem [thread:$0]  (!%p1016_p13), %s1014_s27, 240, %s130_s30, %s118_s4  }
  0x2d   : > { %p724_p9 = scmp.ge.s32.totalorder %s926_s12, 1  ;;  %p155_p3 = scmp.lt.s32.totalorder %s926_s12, 3 }
  0x2e   : > { %s731_s26 = smul.u32 1920, %s926_s12  ;;  %s140_s29 = scalar_lea.vmem [#allocation5], %s734_s3 }
  0x2f   : > { %s147_s5 = sshll.u32 %s140_s29, 4  ;;  %p1047_p4 = pnand %p724_p9, %p155_p3  ;;  %s1056_s5 = int_to_ptr.vmem [resolvable:$true] %s147_s5 }
  0x30   : > { %s1054_s14 = scalar_lea.hbm %s1518_s1, %s731_s26  ;;  %s137_s27 = scalar_lea.sflag [#allocation6], %s1007_s22 }
  0x31   : > { %s830_s30 = scalar_lea.hbm %s1054_s14, 13440  ;;  %s835_s16 = scalar_lea.hbm %s1518_s1, 26880 }
  0x32   : > { %p831_p6 = scmp.ne.s32.totalorder %s1054_s14, %s830_s30  ;;  %p836_p5 = scmp.lt.s32.totalorder %s1054_s14, %s1518_s1 }
  0x33   : > { %p837_p7 = scmp.lt.s32.totalorder %s835_s16, %s830_s30 }
  0x34   : > { %p833_p11 = pnand %p831_p6, %p804_p1 }
  0x35   : > { %p838_p8 = por %p837_p7, %p836_p5 }
  0x36   : > { %p834_p12 = pneg %p833_p11 }
  0x38   : > { %p839_p10 = pnand %p838_p8, %p834_p12 }
  0x3a   : > { %842 = shalt.err (!%p839_p10)
}
  0x3b   : > { %s843_s24 = scalar_lea.vmem %s1056_s5, 13440  ;;  %s929_s25 = smov [#allocation5]  }
  0x3c   : > { %p844_p0 = scmp.ne.s32.totalorder %s1056_s5, %s843_s24  ;;  %s848_s26 = sshll.u32 %s929_s25, 4  ;;  %s849_s26 = int_to_ptr.vmem [resolvable:$false] %s848_s26 }
  0x3d   : > { %s850_s29 = scalar_lea.vmem %s849_s26, 26880  ;;  %p851_p3 = scmp.lt.s32.totalorder %s1056_s5, %s849_s26 }
  0x3e   : > { %p846_p2 = pnand %p844_p0, %p804_p1  ;;  %p852_p6 = scmp.lt.s32.totalorder %s850_s29, %s843_s24 }
  0x40   : > { %p847_p9 = pneg %p846_p2  ;;  %p853_p11 = por %p852_p6, %p851_p3 }
  0x42   : > { %p854_p5 = pnand %p853_p11, %p847_p9 }
  0x44   : > { %857 = shalt.err (!%p854_p5)
}
  0x45   : > { %s930_s7 = smov 3840   ;;  %s931_s8 = smov 1920  }
  0x46   : > { %s932_s30 = smov 120   ;;  %159 = sbr.rel (%p1047_p4) target bundleno = 185 (0xb9), region = 28 }
  0x47   : > { %749 = dma.hbm_to_vmem [thread:$0]  (!%p1016_p13), %s1054_s14, 13440, %s1056_s5, %s137_s27, %s930_s7, %s931_s8, %s932_s30  }
  0x48   : > { %s1086_s3 = sand.u32 (!%p1047_p4), 1, %s918_s10   ;;  %p1527_p1 = scmp.ne.s32.totalorder (!%p1047_p4), %s1522_s19, 0 }
  0x49   : > { %s735_s4 = smul.u32 (!%p1047_p4), 15, %s1086_s3  ;;  %s162_s16 = scalar_lea.sflag (!%p1047_p4), [#allocation3], %s1086_s3 }
  0x4b   : > { %s165_s17 = scalar_lea.vmem [#allocation2], %s735_s4 }
  0x4c   : > { %901 = dma.done.wait (%p1527_p1), %s162_s16, 240  }
  0x4d   : > { %903 = vsyncadd (%p1527_p1), %s162_s16, 4294967056  ;;  %s736_s22 = smul.u32 840, %s1086_s3  ;;  %s171_s28 = scalar_lea.sflag [#allocation6], %s1086_s3 }
  0x4f   : > { %s1098_s5 = scalar_lea.vmem [#allocation5], %s736_s22 }
  0x50   : > { %905 = dma.done.wait (%p1527_p1), %s171_s28, 13440  }
  0x51   : > { %907 = vsyncadd (%p1527_p1), %s171_s28, 4294953856  ;;  %v203_v0 = vld [vmem:[%s165_s17] sm:$0xff]  ;;  %v204_v2 = vld [vmem:[%s165_s17 + $0x8] sm:$0xff]  ;;  %v324_v8 = vlaneseq  ;;  %s1161_s19 = scalar_lea.vmem [#allocation7], %s736_s22  ;;  %s732_s6 = smul.u32 1920, %s973_s13 }
  0x52   : > { %v725_v1 = vmul.f32 -1.442695, %v203_v0  ;;  %v726_v3 = vmul.f32 -1.442695, %v204_v2  ;;  %v217_v18 = vld [vmem:[%s1098_s5] sm:$0xff]  ;;  %v218_v19 = vld [vmem:[%s1098_s5 + $0x8] sm:$0xff] }
  0x53   : > { %v1104_v9 = vshrl.u32 %v324_v8, 7  ;;  %v219_v21 = vld [vmem:[%s1098_s5 + $0x10] sm:$0xff]  ;;  %v220_v22 = vld [vmem:[%s1098_s5 + $0x18] sm:$0xff]  ;;  %v221_v23 = vld [vmem:[%s1098_s5 + $0x20] sm:$0xff]  ;;  %s623_s14 = sshll.u32 %s1161_s19, 4  ;;  %s1458_s24 = scalar_lea.hbm %s1519_s2, %s732_s6  ;;  %s1443_s14 = int_to_ptr.vmem [resolvable:$true] %s623_s14 }
  0x54   : > { %794 = vpow2.f32 %v725_v1  ;;  %v222_v28 = vld [vmem:[%s1098_s5 + $0x28] sm:$0xff]  ;;  %v223_v29 = vld [vmem:[%s1098_s5 + $0x30] sm:$0xff]  ;;  %v224_v30 = vld [vmem:[%s1098_s5 + $0x38] sm:$0xff]  ;;  %s610_s13 = scalar_lea.sflag [#allocation4], %s1086_s3  ;;  %s858_s25 = scalar_lea.vmem %s1443_s14, 13440 }
  0x55   : > { %796 = vpow2.f32 %v726_v3  ;;  %v326_v10 = vsub.s32 0, %v1104_v9  ;;  %v330_v11 = vsub.s32 1, %v1104_v9  ;;  %v334_v12 = vsub.s32 2, %v1104_v9  ;;  %v225_v35 = vld [vmem:[%s1098_s5 + $0x40] sm:$0xff]  ;;  %v226_v36 = vld [vmem:[%s1098_s5 + $0x48] sm:$0xff]  ;;  %v227_v37 = vld [vmem:[%s1098_s5 + $0x50] sm:$0xff]  ;;  %p859_p13 = scmp.ne.s32.totalorder %s1443_s14, %s858_s25 }
  0x56   : > { %v338_v13 = vsub.s32 3, %v1104_v9  ;;  %v342_v14 = vsub.s32 4, %v1104_v9  ;;  %v346_v15 = vsub.s32 5, %v1104_v9  ;;  %v350_v16 = vsub.s32 6, %v1104_v9  ;;  %v228_v38 = vld [vmem:[%s1098_s5 + $0x58] sm:$0xff]  ;;  %v229_v44 = vld [vmem:[%s1098_s5 + $0x60] sm:$0xff] }
  0x57   : > { %v354_v17 = vsub.s32 7, %v1104_v9  ;;  %v230_v45 = vld [vmem:[%s1098_s5 + $0x68] sm:$0xff]  ;;  %v231_v46 = vld [vmem:[%s1098_s5 + $0x70] sm:$0xff]  ;;  %v232_v47 = vld [vmem:[%s1098_s5 + $0x78] sm:$0xff]  ;;  %p1528_p4 = scmp.ne.s32.totalorder %s1523_s20, 0  ;;  %s933_s26 = smov [#allocation7]  }
  0x58   : > { %v233_v48 = vld [vmem:[%s1098_s5 + $0x80] sm:$0xff]  ;;  %v234_v53 = vld [vmem:[%s1098_s5 + $0x88] sm:$0xff]  ;;  %v235_v54 = vld [vmem:[%s1098_s5 + $0x90] sm:$0xff]  ;;  %s862_s29 = sshll.u32 %s933_s26, 4  ;;  %s863_s29 = int_to_ptr.vmem [resolvable:$false] %s862_s29 }
  0x59   : > { %v236_v55 = vld [vmem:[%s1098_s5 + $0x98] sm:$0xff]  ;;  %v237_v56 = vld [vmem:[%s1098_s5 + $0xa0] sm:$0xff]  ;;  %v238_v61 = vld [vmem:[%s1098_s5 + $0xa8] sm:$0xff]  ;;  %p860_p12 = pnand %p859_p13, %p1528_p4  ;;  %s864_s7 = scalar_lea.vmem %s863_s29, 26880 }
  0x5a   : > { %v239_v62 = vld [vmem:[%s1098_s5 + $0xb0] sm:$0xff]  ;;  %v240_v63 = vld [vmem:[%s1098_s5 + $0xb8] sm:$0xff]  ;;  %v241_v0 = vld [vmem:[%s1098_s5 + $0xc0] sm:$0xff]  ;;  %p865_p8 = scmp.lt.s32.totalorder %s1443_s14, %s863_s29  ;;  %p866_p10 = scmp.lt.s32.totalorder %s864_s7, %s858_s25 }
  0x5b   : > { %v245_v8 = vld [vmem:[%s1098_s5 + $0xe0] sm:$0xff]  ;;  %p861_p7 = pneg %p860_p12 }
  0x5c   : > { %p867_p0 = por %p866_p10, %p865_p8 }
  0x5e   : > { %p868_p2 = pnand %p867_p0, %p861_p7 }
  0x61   : > { %v795_v4 = vpop.eup %794 }
  0x62   : > { %v211_v5 = vadd.f32 1.0, %v795_v4  ;;  %v797_v6 = vpop.eup %796 }
  0x63   : > { %v212_v7 = vadd.f32 1.0, %v797_v6  ;;  %v243_v6 = vld [vmem:[%s1098_s5 + $0xd0] sm:$0xff] }
  0x64   : > { %798 = vrcp.f32 %v211_v5  ;;  %v242_v5 = vld [vmem:[%s1098_s5 + $0xc8] sm:$0xff] }
  0x65   : > { %800 = vrcp.f32 %v212_v7  ;;  %v244_v7 = vld [vmem:[%s1098_s5 + $0xd8] sm:$0xff] }
  0x71   : > { %v799_v20 = vpop.eup %798 }
  0x72   : > { %v1119_v24 = vrot.slane %v799_v20, %v326_v10  ;;  %v1121_v25 = vrot.slane %v799_v20, %v330_v11  ;;  %v1123_v26 = vrot.slane %v799_v20, %v334_v12  ;;  %v1125_v27 = vrot.slane %v799_v20, %v338_v13  ;;  %v801_v39 = vpop.eup %800 }
  0x73   : > { %v1130_v31 = vrot.slane %v799_v20, %v342_v14  ;;  %v1132_v32 = vrot.slane %v799_v20, %v346_v15  ;;  %v1134_v33 = vrot.slane %v799_v20, %v350_v16  ;;  %v1136_v34 = vrot.slane %v799_v20, %v354_v17 }
  0x74   : > { %v399_v40 = vmul.f32 %v1119_v24, %v217_v18  ;;  %v400_v41 = vmul.f32 %v1121_v25, %v218_v19  ;;  %v401_v42 = vmul.f32 %v1123_v26, %v219_v21  ;;  %v402_v43 = vmul.f32 %v1125_v27, %v220_v22  ;;  %v250_v21 = vld [vmem:[%s1098_s5 + $0x108] sm:$0xff]  ;;  %v251_v22 = vld [vmem:[%s1098_s5 + $0x110] sm:$0xff] }
  0x75   : > { %v403_v49 = vmul.f32 %v1130_v31, %v221_v23  ;;  %v404_v50 = vmul.f32 %v1132_v32, %v222_v28  ;;  %v405_v51 = vmul.f32 %v1134_v33, %v223_v29  ;;  %v406_v52 = vmul.f32 %v1136_v34, %v224_v30  ;;  %v252_v23 = vld [vmem:[%s1098_s5 + $0x118] sm:$0xff]  ;;  %v253_v28 = vld [vmem:[%s1098_s5 + $0x120] sm:$0xff] }
  0x76   : > { %504 = vst [vmem:[%s1161_s19] sm:$0xff] %v399_v40  ;;  %505 = vst [vmem:[%s1161_s19 + $0x8] sm:$0xff] %v400_v41  ;;  %v1167_v57 = vrot.slane %v801_v39, %v326_v10  ;;  %v1169_v58 = vrot.slane %v801_v39, %v330_v11  ;;  %v1171_v59 = vrot.slane %v801_v39, %v334_v12  ;;  %v257_v40 = vld [vmem:[%s1098_s5 + $0x140] sm:$0xff] }
  0x77   : > { %506 = vst [vmem:[%s1161_s19 + $0x10] sm:$0xff] %v401_v42  ;;  %507 = vst [vmem:[%s1161_s19 + $0x18] sm:$0xff] %v402_v43  ;;  %v1173_v60 = vrot.slane %v801_v39, %v338_v13  ;;  %v1183_v1 = vrot.slane %v801_v39, %v342_v14  ;;  %v1185_v2 = vrot.slane %v801_v39, %v346_v15  ;;  %v246_v13 = vld [vmem:[%s1098_s5 + $0xe8] sm:$0xff]  ;;  %v247_v14 = vld [vmem:[%s1098_s5 + $0xf0] sm:$0xff] }
  0x78   : > { %508 = vst [vmem:[%s1161_s19 + $0x20] sm:$0xff] %v403_v49  ;;  %509 = vst [vmem:[%s1161_s19 + $0x28] sm:$0xff] %v404_v50  ;;  %v1187_v3 = vrot.slane %v801_v39, %v350_v16  ;;  %v414_v4 = vmul.f32 %v1119_v24, %v232_v47  ;;  %v407_v9 = vmul.f32 %v1167_v57, %v225_v35  ;;  %v248_v15 = vld [vmem:[%s1098_s5 + $0xf8] sm:$0xff]  ;;  %v249_v16 = vld [vmem:[%s1098_s5 + $0x100] sm:$0xff] }
  0x79   : > { %510 = vst [vmem:[%s1161_s19 + $0x30] sm:$0xff] %v405_v51  ;;  %511 = vst [vmem:[%s1161_s19 + $0x38] sm:$0xff] %v406_v52  ;;  %v408_v10 = vmul.f32 %v1169_v58, %v226_v36  ;;  %v409_v11 = vmul.f32 %v1171_v59, %v227_v37  ;;  %v410_v12 = vmul.f32 %v1173_v60, %v228_v38  ;;  %v254_v37 = vld [vmem:[%s1098_s5 + $0x128] sm:$0xff]  ;;  %v255_v38 = vld [vmem:[%s1098_s5 + $0x130] sm:$0xff] }
  0x7a   : > { %v411_v17 = vmul.f32 %v1183_v1, %v229_v44  ;;  %v412_v18 = vmul.f32 %v1185_v2, %v230_v45  ;;  %v413_v19 = vmul.f32 %v1187_v3, %v231_v46  ;;  %519 = vst [vmem:[%s1161_s19 + $0x78] sm:$0xff] %v414_v4  ;;  %v415_v20 = vmul.f32 %v1121_v25, %v233_v48  ;;  %v256_v39 = vld [vmem:[%s1098_s5 + $0x138] sm:$0xff]  ;;  %v258_v45 = vld [vmem:[%s1098_s5 + $0x148] sm:$0xff]  ;;  %v259_v46 = vld [vmem:[%s1098_s5 + $0x150] sm:$0xff] }
  0x7b   : > { %512 = vst [vmem:[%s1161_s19 + $0x40] sm:$0xff] %v407_v9  ;;  %513 = vst [vmem:[%s1161_s19 + $0x48] sm:$0xff] %v408_v10  ;;  %v416_v29 = vmul.f32 %v1123_v26, %v234_v53  ;;  %v417_v30 = vmul.f32 %v1125_v27, %v235_v54  ;;  %v418_v35 = vmul.f32 %v1130_v31, %v236_v55  ;;  %v260_v47 = vld [vmem:[%s1098_s5 + $0x158] sm:$0xff]  ;;  %v261_v48 = vld [vmem:[%s1098_s5 + $0x160] sm:$0xff] }
  0x7c   : > { %514 = vst [vmem:[%s1161_s19 + $0x50] sm:$0xff] %v409_v11  ;;  %515 = vst [vmem:[%s1161_s19 + $0x58] sm:$0xff] %v410_v12  ;;  %v419_v36 = vmul.f32 %v1132_v32, %v237_v56  ;;  %v420_v41 = vmul.f32 %v1134_v33, %v238_v61  ;;  %v421_v42 = vmul.f32 %v1136_v34, %v239_v62  ;;  %v262_v53 = vld [vmem:[%s1098_s5 + $0x168] sm:$0xff]  ;;  %v263_v54 = vld [vmem:[%s1098_s5 + $0x170] sm:$0xff] }
  0x7d   : > { %516 = vst [vmem:[%s1161_s19 + $0x60] sm:$0xff] %v411_v17  ;;  %517 = vst [vmem:[%s1161_s19 + $0x68] sm:$0xff] %v412_v18  ;;  %v422_v43 = vmul.f32 %v1167_v57, %v240_v63  ;;  %v423_v44 = vmul.f32 %v1169_v58, %v241_v0  ;;  %v424_v49 = vmul.f32 %v1171_v59, %v242_v5  ;;  %v264_v55 = vld [vmem:[%s1098_s5 + $0x178] sm:$0xff]  ;;  %v265_v56 = vld [vmem:[%s1098_s5 + $0x180] sm:$0xff] }
  0x7e   : > { %518 = vst [vmem:[%s1161_s19 + $0x70] sm:$0xff] %v413_v19  ;;  %520 = vst [vmem:[%s1161_s19 + $0x80] sm:$0xff] %v415_v20  ;;  %v425_v50 = vmul.f32 %v1173_v60, %v243_v6  ;;  %v426_v51 = vmul.f32 %v1183_v1, %v244_v7  ;;  %v427_v52 = vmul.f32 %v1185_v2, %v245_v8  ;;  %v266_v4 = vld [vmem:[%s1098_s5 + $0x188] sm:$0xff]  ;;  %v267_v5 = vld [vmem:[%s1098_s5 + $0x190] sm:$0xff] }
  0x7f   : > { %521 = vst [vmem:[%s1161_s19 + $0x88] sm:$0xff] %v416_v29  ;;  %522 = vst [vmem:[%s1161_s19 + $0x90] sm:$0xff] %v417_v30  ;;  %v428_v61 = vmul.f32 %v1187_v3, %v246_v13  ;;  %v429_v62 = vmul.f32 %v1119_v24, %v247_v14  ;;  %v430_v63 = vmul.f32 %v1121_v25, %v248_v15  ;;  %v268_v6 = vld [vmem:[%s1098_s5 + $0x198] sm:$0xff]  ;;  %v269_v7 = vld [vmem:[%s1098_s5 + $0x1a0] sm:$0xff] }
  0x80   : > { %523 = vst [vmem:[%s1161_s19 + $0x98] sm:$0xff] %v418_v35  ;;  %524 = vst [vmem:[%s1161_s19 + $0xa0] sm:$0xff] %v419_v36  ;;  %v431_v0 = vmul.f32 %v1123_v26, %v249_v16  ;;  %v432_v8 = vmul.f32 %v1125_v27, %v250_v21  ;;  %v433_v9 = vmul.f32 %v1130_v31, %v251_v22  ;;  %v270_v12 = vld [vmem:[%s1098_s5 + $0x1a8] sm:$0xff]  ;;  %v271_v13 = vld [vmem:[%s1098_s5 + $0x1b0] sm:$0xff] }
  0x81   : > { %525 = vst [vmem:[%s1161_s19 + $0xa8] sm:$0xff] %v420_v41  ;;  %526 = vst [vmem:[%s1161_s19 + $0xb0] sm:$0xff] %v421_v42  ;;  %v434_v10 = vmul.f32 %v1132_v32, %v252_v23  ;;  %v435_v11 = vmul.f32 %v1134_v33, %v253_v28  ;;  %v272_v14 = vld [vmem:[%s1098_s5 + $0x1b8] sm:$0xff]  ;;  %v273_v15 = vld [vmem:[%s1098_s5 + $0x1c0] sm:$0xff]  ;;  %v436_v16 = vmul.f32 %v1136_v34, %v254_v37 }
  0x82   : > { %527 = vst [vmem:[%s1161_s19 + $0xb8] sm:$0xff] %v422_v43  ;;  %528 = vst [vmem:[%s1161_s19 + $0xc0] sm:$0xff] %v423_v44  ;;  %v437_v17 = vmul.f32 %v1167_v57, %v255_v38  ;;  %v438_v18 = vmul.f32 %v1169_v58, %v256_v39  ;;  %v439_v19 = vmul.f32 %v1171_v59, %v257_v40  ;;  %v274_v20 = vld [vmem:[%s1098_s5 + $0x1c8] sm:$0xff]  ;;  %v275_v21 = vld [vmem:[%s1098_s5 + $0x1d0] sm:$0xff] }
  0x83   : > { %529 = vst [vmem:[%s1161_s19 + $0xc8] sm:$0xff] %v424_v49  ;;  %530 = vst [vmem:[%s1161_s19 + $0xd0] sm:$0xff] %v425_v50  ;;  %v276_v22 = vld [vmem:[%s1098_s5 + $0x1d8] sm:$0xff]  ;;  %v277_v23 = vld [vmem:[%s1098_s5 + $0x1e0] sm:$0xff]  ;;  %v440_v28 = vmul.f32 %v1173_v60, %v258_v45  ;;  %v441_v29 = vmul.f32 %v1183_v1, %v259_v46  ;;  %v442_v30 = vmul.f32 %v1185_v2, %v260_v47 }
  0x84   : > { %531 = vst [vmem:[%s1161_s19 + $0xd8] sm:$0xff] %v426_v51  ;;  %532 = vst [vmem:[%s1161_s19 + $0xe0] sm:$0xff] %v427_v52  ;;  %v443_v35 = vmul.f32 %v1187_v3, %v261_v48  ;;  %v278_v36 = vld [vmem:[%s1098_s5 + $0x1e8] sm:$0xff]  ;;  %v279_v37 = vld [vmem:[%s1098_s5 + $0x1f0] sm:$0xff]  ;;  %v444_v40 = vmul.f32 %v1119_v24, %v262_v53  ;;  %v445_v41 = vmul.f32 %v1121_v25, %v263_v54 }
  0x85   : > { %533 = vst [vmem:[%s1161_s19 + $0xe8] sm:$0xff] %v428_v61  ;;  %534 = vst [vmem:[%s1161_s19 + $0xf0] sm:$0xff] %v429_v62  ;;  %v280_v38 = vld [vmem:[%s1098_s5 + $0x1f8] sm:$0xff]  ;;  %v281_v39 = vld [vmem:[%s1098_s5 + $0x200] sm:$0xff]  ;;  %v446_v42 = vmul.f32 %v1123_v26, %v264_v55  ;;  %v447_v43 = vmul.f32 %v1125_v27, %v265_v56  ;;  %v448_v48 = vmul.f32 %v1130_v31, %v266_v4 }
  0x86   : > { %535 = vst [vmem:[%s1161_s19 + $0xf8] sm:$0xff] %v430_v63  ;;  %536 = vst [vmem:[%s1161_s19 + $0x100] sm:$0xff] %v431_v0  ;;  %v282_v44 = vld [vmem:[%s1098_s5 + $0x208] sm:$0xff]  ;;  %v283_v45 = vld [vmem:[%s1098_s5 + $0x210] sm:$0xff]  ;;  %v449_v49 = vmul.f32 %v1132_v32, %v267_v5  ;;  %v450_v50 = vmul.f32 %v1134_v33, %v268_v6  ;;  %v451_v51 = vmul.f32 %v1136_v34, %v269_v7 }
  0x87   : > { %537 = vst [vmem:[%s1161_s19 + $0x108] sm:$0xff] %v432_v8  ;;  %538 = vst [vmem:[%s1161_s19 + $0x110] sm:$0xff] %v433_v9  ;;  %v284_v46 = vld [vmem:[%s1098_s5 + $0x218] sm:$0xff]  ;;  %v285_v47 = vld [vmem:[%s1098_s5 + $0x220] sm:$0xff]  ;;  %v452_v56 = vmul.f32 %v1167_v57, %v270_v12  ;;  %v453_v61 = vmul.f32 %v1169_v58, %v271_v13  ;;  %v454_v62 = vmul.f32 %v1171_v59, %v272_v14 }
  0x88   : > { %539 = vst [vmem:[%s1161_s19 + $0x118] sm:$0xff] %v434_v10  ;;  %540 = vst [vmem:[%s1161_s19 + $0x120] sm:$0xff] %v435_v11  ;;  %v286_v52 = vld [vmem:[%s1098_s5 + $0x228] sm:$0xff]  ;;  %v287_v53 = vld [vmem:[%s1098_s5 + $0x230] sm:$0xff]  ;;  %v455_v63 = vmul.f32 %v1173_v60, %v273_v15  ;;  %v456_v7 = vmul.f32 %v1183_v1, %v274_v20  ;;  %v457_v8 = vmul.f32 %v1185_v2, %v275_v21 }
  0x89   : > { %541 = vst [vmem:[%s1161_s19 + $0x128] sm:$0xff] %v436_v16  ;;  %542 = vst [vmem:[%s1161_s19 + $0x130] sm:$0xff] %v437_v17  ;;  %v288_v54 = vld [vmem:[%s1098_s5 + $0x238] sm:$0xff]  ;;  %v289_v55 = vld [vmem:[%s1098_s5 + $0x240] sm:$0xff]  ;;  %v458_v9 = vmul.f32 %v1187_v3, %v276_v22  ;;  %v459_v10 = vmul.f32 %v1119_v24, %v277_v23  ;;  %v460_v15 = vmul.f32 %v1121_v25, %v278_v36 }
  0x8a   : > { %543 = vst [vmem:[%s1161_s19 + $0x138] sm:$0xff] %v438_v18  ;;  %544 = vst [vmem:[%s1161_s19 + $0x140] sm:$0xff] %v439_v19  ;;  %v290_v0 = vld [vmem:[%s1098_s5 + $0x248] sm:$0xff]  ;;  %v291_v4 = vld [vmem:[%s1098_s5 + $0x250] sm:$0xff]  ;;  %v461_v16 = vmul.f32 %v1123_v26, %v279_v37  ;;  %v462_v17 = vmul.f32 %v1125_v27, %v280_v38  ;;  %v463_v18 = vmul.f32 %v1130_v31, %v281_v39 }
  0x8b   : > { %545 = vst [vmem:[%s1161_s19 + $0x148] sm:$0xff] %v440_v28  ;;  %546 = vst [vmem:[%s1161_s19 + $0x150] sm:$0xff] %v441_v29  ;;  %v292_v5 = vld [vmem:[%s1098_s5 + $0x258] sm:$0xff]  ;;  %v293_v6 = vld [vmem:[%s1098_s5 + $0x260] sm:$0xff]  ;;  %v464_v22 = vmul.f32 %v1132_v32, %v282_v44  ;;  %v465_v23 = vmul.f32 %v1134_v33, %v283_v45  ;;  %v466_v28 = vmul.f32 %v1136_v34, %v284_v46 }
  0x8c   : > { %547 = vst [vmem:[%s1161_s19 + $0x158] sm:$0xff] %v442_v30  ;;  %548 = vst [vmem:[%s1161_s19 + $0x160] sm:$0xff] %v443_v35  ;;  %v294_v11 = vld [vmem:[%s1098_s5 + $0x268] sm:$0xff]  ;;  %v295_v12 = vld [vmem:[%s1098_s5 + $0x270] sm:$0xff]  ;;  %v467_v29 = vmul.f32 %v1167_v57, %v285_v47  ;;  %v468_v37 = vmul.f32 %v1169_v58, %v286_v52  ;;  %v469_v38 = vmul.f32 %v1171_v59, %v287_v53 }
  0x8d   : > { %549 = vst [vmem:[%s1161_s19 + $0x168] sm:$0xff] %v444_v40  ;;  %550 = vst [vmem:[%s1161_s19 + $0x170] sm:$0xff] %v445_v41  ;;  %v296_v13 = vld [vmem:[%s1098_s5 + $0x278] sm:$0xff]  ;;  %v297_v14 = vld [vmem:[%s1098_s5 + $0x280] sm:$0xff]  ;;  %v470_v39 = vmul.f32 %v1173_v60, %v288_v54  ;;  %v471_v40 = vmul.f32 %v1183_v1, %v289_v55  ;;  %v472_v44 = vmul.f32 %v1185_v2, %v290_v0 }
  0x8e   : > { %551 = vst [vmem:[%s1161_s19 + $0x178] sm:$0xff] %v446_v42  ;;  %552 = vst [vmem:[%s1161_s19 + $0x180] sm:$0xff] %v447_v43  ;;  %v298_v19 = vld [vmem:[%s1098_s5 + $0x288] sm:$0xff]  ;;  %v299_v20 = vld [vmem:[%s1098_s5 + $0x290] sm:$0xff]  ;;  %v473_v45 = vmul.f32 %v1187_v3, %v291_v4  ;;  %v474_v46 = vmul.f32 %v1119_v24, %v292_v5  ;;  %v475_v47 = vmul.f32 %v1121_v25, %v293_v6 }
  0x8f   : > { %553 = vst [vmem:[%s1161_s19 + $0x188] sm:$0xff] %v448_v48  ;;  %554 = vst [vmem:[%s1161_s19 + $0x190] sm:$0xff] %v449_v49  ;;  %v300_v21 = vld [vmem:[%s1098_s5 + $0x298] sm:$0xff]  ;;  %v301_v30 = vld [vmem:[%s1098_s5 + $0x2a0] sm:$0xff]  ;;  %v477_v52 = vmul.f32 %v1125_v27, %v295_v12  ;;  %v478_v53 = vmul.f32 %v1130_v31, %v296_v13  ;;  %v479_v54 = vmul.f32 %v1132_v32, %v297_v14 }
  0x90   : > { %555 = vst [vmem:[%s1161_s19 + $0x198] sm:$0xff] %v450_v50  ;;  %556 = vst [vmem:[%s1161_s19 + $0x1a0] sm:$0xff] %v451_v51  ;;  %v302_v35 = vld [vmem:[%s1098_s5 + $0x2a8] sm:$0xff]  ;;  %v303_v36 = vld [vmem:[%s1098_s5 + $0x2b0] sm:$0xff]  ;;  %v476_v51 = vmul.f32 %v1123_v26, %v294_v11  ;;  %v482_v0 = vmul.f32 %v1167_v57, %v300_v21  ;;  %v483_v4 = vmul.f32 %v1169_v58, %v301_v30 }
  0x91   : > { %557 = vst [vmem:[%s1161_s19 + $0x1a8] sm:$0xff] %v452_v56  ;;  %558 = vst [vmem:[%s1161_s19 + $0x1b0] sm:$0xff] %v453_v61  ;;  %v304_v41 = vld [vmem:[%s1098_s5 + $0x2b8] sm:$0xff]  ;;  %v305_v42 = vld [vmem:[%s1098_s5 + $0x2c0] sm:$0xff] }
  0x92   : > { %559 = vst [vmem:[%s1161_s19 + $0x1b8] sm:$0xff] %v454_v62  ;;  %560 = vst [vmem:[%s1161_s19 + $0x1c0] sm:$0xff] %v455_v63  ;;  %v306_v43 = vld [vmem:[%s1098_s5 + $0x2c8] sm:$0xff]  ;;  %v307_v48 = vld [vmem:[%s1098_s5 + $0x2d0] sm:$0x1]  ;;  %v480_v62 = vmul.f32 %v1134_v33, %v298_v19  ;;  %v481_v63 = vmul.f32 %v1136_v34, %v299_v20  ;;  %v487_v11 = vmul.f32 %v1185_v2, %v305_v42 }
  0x93   : > { %561 = vst [vmem:[%s1161_s19 + $0x1c8] sm:$0xff] %v456_v7  ;;  %562 = vst [vmem:[%s1161_s19 + $0x1d0] sm:$0xff] %v457_v8  ;;  %v308_v49 = vld [vmem:[%s1098_s5 + $0x2d8] sm:$0x1]  ;;  %v309_v50 = vld [vmem:[%s1098_s5 + $0x2e0] sm:$0x1]  ;;  %v484_v8 = vmul.f32 %v1171_v59, %v302_v35 }
  0x94   : > { %563 = vst [vmem:[%s1161_s19 + $0x1d8] sm:$0xff] %v458_v9  ;;  %564 = vst [vmem:[%s1161_s19 + $0x1e0] sm:$0xff] %v459_v10  ;;  %v310_v55 = vld [vmem:[%s1098_s5 + $0x2e8] sm:$0x1]  ;;  %v311_v56 = vld [vmem:[%s1098_s5 + $0x2f0] sm:$0x1]  ;;  %v485_v9 = vmul.f32 %v1173_v60, %v303_v36  ;;  %v486_v10 = vmul.f32 %v1183_v1, %v304_v41 }
  0x95   : > { %565 = vst [vmem:[%s1161_s19 + $0x1e8] sm:$0xff] %v460_v15  ;;  %566 = vst [vmem:[%s1161_s19 + $0x1f0] sm:$0xff] %v461_v16  ;;  %v312_v61 = vld [vmem:[%s1098_s5 + $0x2f8] sm:$0x1]  ;;  %v313_v5 = vld [vmem:[%s1098_s5 + $0x300] sm:$0x1]  ;;  %v488_v15 = vmul.f32 %v1187_v3, %v306_v43  ;;  %v489_v16 = vmul.f32 %v1119_v24, %v307_v48  ;;  %v493_v24 = vmul.f32 %v1130_v31, %v311_v56 }
  0x96   : > { %567 = vst [vmem:[%s1161_s19 + $0x1f8] sm:$0xff] %v462_v17  ;;  %568 = vst [vmem:[%s1161_s19 + $0x200] sm:$0xff] %v463_v18  ;;  %v314_v6 = vld [vmem:[%s1098_s5 + $0x308] sm:$0x1]  ;;  %v315_v7 = vld [vmem:[%s1098_s5 + $0x310] sm:$0x1]  ;;  %v490_v17 = vmul.f32 %v1121_v25, %v308_v49  ;;  %v491_v18 = vmul.f32 %v1123_v26, %v309_v50  ;;  %v494_v25 = vmul.f32 %v1132_v32, %v312_v61 }
  0x97   : > { %569 = vst [vmem:[%s1161_s19 + $0x208] sm:$0xff] %v464_v22  ;;  %570 = vst [vmem:[%s1161_s19 + $0x210] sm:$0xff] %v465_v23  ;;  %v316_v12 = vld [vmem:[%s1098_s5 + $0x318] sm:$0x1]  ;;  %v317_v13 = vld [vmem:[%s1098_s5 + $0x320] sm:$0x1]  ;;  %v492_v22 = vmul.f32 %v1125_v27, %v310_v55  ;;  %v495_v26 = vmul.f32 %v1134_v33, %v313_v5  ;;  %v496_v27 = vmul.f32 %v1136_v34, %v314_v6 }
  0x98   : > { %571 = vst [vmem:[%s1161_s19 + $0x218] sm:$0xff] %v466_v28  ;;  %572 = vst [vmem:[%s1161_s19 + $0x220] sm:$0xff] %v467_v29  ;;  %v318_v14 = vld [vmem:[%s1098_s5 + $0x328] sm:$0x1]  ;;  %v319_v19 = vld [vmem:[%s1098_s5 + $0x330] sm:$0x1]  ;;  %v497_v31 = vmul.f32 %v1167_v57, %v315_v7  ;;  %v498_v32 = vmul.f32 %v1169_v58, %v316_v12  ;;  %v499_v33 = vmul.f32 %v1171_v59, %v317_v13 }
  0x99   : > { %573 = vst [vmem:[%s1161_s19 + $0x228] sm:$0xff] %v468_v37  ;;  %574 = vst [vmem:[%s1161_s19 + $0x230] sm:$0xff] %v469_v38  ;;  %v320_v20 = vld [vmem:[%s1098_s5 + $0x338] sm:$0x1]  ;;  %v321_v21 = vld [vmem:[%s1098_s5 + $0x340] sm:$0x1]  ;;  %v500_v34 = vmul.f32 %v1173_v60, %v318_v14  ;;  %v501_v57 = vmul.f32 %v1183_v1, %v319_v19 }
  0x9a   : > { %575 = vst [vmem:[%s1161_s19 + $0x238] sm:$0xff] %v470_v39  ;;  %576 = vst [vmem:[%s1161_s19 + $0x240] sm:$0xff] %v471_v40  ;;  %v502_v58 = vmul.f32 %v1185_v2, %v320_v20  ;;  %v503_v59 = vmul.f32 %v1187_v3, %v321_v21 }
  0x9b   : > { %577 = vst [vmem:[%s1161_s19 + $0x248] sm:$0xff] %v472_v44  ;;  %578 = vst [vmem:[%s1161_s19 + $0x250] sm:$0xff] %v473_v45 }
  0x9c   : > { %579 = vst [vmem:[%s1161_s19 + $0x258] sm:$0xff] %v474_v46  ;;  %580 = vst [vmem:[%s1161_s19 + $0x260] sm:$0xff] %v475_v47 }
  0x9d   : > { %581 = vst [vmem:[%s1161_s19 + $0x268] sm:$0xff] %v476_v51  ;;  %582 = vst [vmem:[%s1161_s19 + $0x270] sm:$0xff] %v477_v52 }
  0x9e   : > { %583 = vst [vmem:[%s1161_s19 + $0x278] sm:$0xff] %v478_v53  ;;  %584 = vst [vmem:[%s1161_s19 + $0x280] sm:$0xff] %v479_v54 }
  0x9f   : > { %585 = vst [vmem:[%s1161_s19 + $0x288] sm:$0xff] %v480_v62  ;;  %586 = vst [vmem:[%s1161_s19 + $0x290] sm:$0xff] %v481_v63 }
  0xa0   : > { %587 = vst [vmem:[%s1161_s19 + $0x298] sm:$0xff] %v482_v0  ;;  %588 = vst [vmem:[%s1161_s19 + $0x2a0] sm:$0xff] %v483_v4 }
  0xa1   : > { %589 = vst [vmem:[%s1161_s19 + $0x2a8] sm:$0xff] %v484_v8  ;;  %590 = vst [vmem:[%s1161_s19 + $0x2b0] sm:$0xff] %v485_v9 }
  0xa2   : > { %591 = vst [vmem:[%s1161_s19 + $0x2b8] sm:$0xff] %v486_v10  ;;  %592 = vst [vmem:[%s1161_s19 + $0x2c0] sm:$0xff] %v487_v11 }
  0xa3   : > { %593 = vst [vmem:[%s1161_s19 + $0x2c8] sm:$0xff] %v488_v15  ;;  %594 = vst [vmem:[%s1161_s19 + $0x2d0] sm:$0x1] %v489_v16 }
  0xa4   : > { %595 = vst [vmem:[%s1161_s19 + $0x2d8] sm:$0x1] %v490_v17  ;;  %596 = vst [vmem:[%s1161_s19 + $0x2e0] sm:$0x1] %v491_v18 }
  0xa5   : > { %597 = vst [vmem:[%s1161_s19 + $0x2e8] sm:$0x1] %v492_v22  ;;  %598 = vst [vmem:[%s1161_s19 + $0x2f0] sm:$0x1] %v493_v24 }
  0xa6   : > { %599 = vst [vmem:[%s1161_s19 + $0x2f8] sm:$0x1] %v494_v25  ;;  %600 = vst [vmem:[%s1161_s19 + $0x300] sm:$0x1] %v495_v26 }
  0xa7   : > { %601 = vst [vmem:[%s1161_s19 + $0x308] sm:$0x1] %v496_v27  ;;  %602 = vst [vmem:[%s1161_s19 + $0x310] sm:$0x1] %v497_v31 }
  0xa8   : > { %603 = vst [vmem:[%s1161_s19 + $0x318] sm:$0x1] %v498_v32  ;;  %604 = vst [vmem:[%s1161_s19 + $0x320] sm:$0x1] %v499_v33 }
  0xa9   : > { %605 = vst [vmem:[%s1161_s19 + $0x328] sm:$0x1] %v500_v34  ;;  %606 = vst [vmem:[%s1161_s19 + $0x330] sm:$0x1] %v501_v57 }
  0xaa   : > { %607 = vst [vmem:[%s1161_s19 + $0x338] sm:$0x1] %v502_v58  ;;  %608 = vst [vmem:[%s1161_s19 + $0x340] sm:$0x1] %v503_v59 }
  0xab   : > { %871 = shalt.err (!%p868_p2)
}
  0xac   : > { %s872_s8 = scalar_lea.hbm %s1458_s24, 13440  ;;  %s876_s16 = scalar_lea.hbm %s1519_s2, 26880 }
  0xad   : > { %p873_p9 = scmp.ne.s32.totalorder %s1458_s24, %s872_s8  ;;  %p877_p11 = scmp.lt.s32.totalorder %s1458_s24, %s1519_s2 }
  0xae   : > { %p878_p5 = scmp.lt.s32.totalorder %s876_s16, %s872_s8 }
  0xaf   : > { %p874_p3 = pnand %p873_p9, %p1528_p4 }
  0xb0   : > { %p879_p1 = por %p878_p5, %p877_p11 }
  0xb1   : > { %p875_p6 = pneg %p874_p3 }
  0xb3   : > { %p880_p13 = pnand %p879_p1, %p875_p6 }
  0xb5   : > { %883 = shalt.err (!%p880_p13)
}
  0xb6   : > { %s934_s28 = smov 1920   ;;  %s935_s5 = smov 3840  }
  0xb7   : > { %s936_s19 = smov 120  }
  0xb8   : > { %741 = dma.vmem_to_hbm [thread:$0]  (%p1528_p4), %s1443_s14, 13440, %s1458_s24, %s610_s13, %s934_s28, %s935_s5, %s936_s19  }
  0xb9 PF: > { %s638_s6 = sand.u32 1, %s914_s9   ;;  %p1529_p12 = scmp.ne.s32.totalorder %s1524_s21, 0 }
  0xba   : > { %p1530_p7 = scmp.ge.s32.totalorder %s926_s12, 2  ;;  %s639_s27 = scalar_lea.sflag [#allocation4], %s638_s6 }
  0xbc   : > { %p751_p8 = pnand %p1530_p7, %p1529_p12 }
  0xbe   : > { %p752_p10 = pneg %p751_p8 }
  0xc0   : > { %909 = dma.done.wait (%p752_p10), %s639_s27, 13440  }
  0xc1   : > { %911 = vsyncadd (%p752_p10), %s639_s27, 4294953856  ;;  %p18_p0 = scmp.ge.s32.totalorder %s977_s15, 4   ;;  %s1531_s9 = smov %s918_s10 }
  0xc2   : > { %s1532_s10 = smov %s922_s11  ;;  %s1533_s11 = smov %s989_s18 }
  0xc3   : > { %s1534_s12 = smov %s977_s15  ;;  %20 = sbr.rel (!%p18_p0) target bundleno = 7 (0x7), region = 86 }
  0xc8   :  { %644 = vsyncpa [#allocation3], 1 }
  0xc9   :  { %646 = vsyncpa [#allocation3 + $0x1], 1 }
  0xca   :  { %647 = vsyncpa [#allocation6], 1 }
  0xcb   :  { %649 = vsyncpa [#allocation6 + $0x1], 1 }
  0xcc   :  { %650 = vsyncpa [#allocation4], 1 }
  0xcd   :  { %652 = vsyncpa [#allocation4 + $0x1], 1 }

</bundles_post_ra>
